<compile_context>
chip_gen: v5e
topology: v5e:2x2
jax: 0.10.0
libtpu: 0.0.40
codegen_flags: <defaults>
</compile_context>

<pallas_src>
import numpy as np
import jax
import jax.numpy as jnp
from jax.experimental import pallas as pl
from jax.experimental.pallas import tpu as pltpu

LLAMA_TOKEN_END = 128256
AUDIO_TOKEN_START = LLAMA_TOKEN_END + 10
END_OF_AUDIO = LLAMA_TOKEN_END + 2
END_OF_HUMAN = LLAMA_TOKEN_END + 4
END_OF_TEXT = 128009
SNAC_VOCAB_SIZE = 4096
START_OF_AUDIO = LLAMA_TOKEN_END + 1
START_OF_GPT = LLAMA_TOKEN_END + 5
START_OF_HUMAN = LLAMA_TOKEN_END + 3

_LANES = 128            # TPU lane width (last block dim, always 128)
_MAX_BLOCK_ROWS = 2048  # 2048 x 128 int32 = 1 MiB per block buffer
_SPLIT_MIN_ROWS = 256   # <= 128 KiB total: single block is cheapest


def _mod7(x):
    """Exact ``x % 7`` for non-negative int32 vectors using only shifts/ands/
    adds/selects (no vector integer division, which Mosaic may not lower).
    Uses 8 == 1 (mod 7): the sum of base-8 digits of x is congruent to x."""
    s = x & 7
    r = x >> 3
    for _ in range(10):          # 11 groups of 3 bits cover all of int32
        s = s + (r & 7)
        r = r >> 3
    s = (s & 7) + (s >> 3)       # s <= 77  ->  s <= 16
    s = jnp.where(s >= 7, s - 7, s)
    s = jnp.where(s >= 7, s - 7, s)
    return s


def _tokens_to_snac_kernel(tok_ref, out_ref):
    # tok_ref/out_ref: (block_rows, 128) int32, a contiguous slab of the flat
    # token stream.  Offsets are derived in-kernel from the global flat index,
    # so the kernel body is a single streamed VPU subtract (DMA-bound).
    rows, lanes = out_ref.shape
    row = jax.lax.broadcasted_iota(jnp.int32, (rows, lanes), 0)
    lane = jax.lax.broadcasted_iota(jnp.int32, (rows, lanes), 1)
    flat = (pl.program_id(0) * rows + row) * lanes + lane   # global flat index
    col = _mod7(flat)                                       # frame column 0..6
    out_ref[...] = tok_ref[...] - (col * SNAC_VOCAB_SIZE + AUDIO_TOKEN_START)


def tokens_to_snac(tokens: jnp.ndarray, validate: bool = False):
    """JAX/Pallas equivalent of OrpheusInference.tokens_to_snac."""
    tokens = jnp.asarray(tokens, dtype=jnp.int32)
    total = tokens.shape[0]
    assert total % 7 == 0, "Token length must be divisible by 7"
    n = total // 7

    # Block selection: rows of 128 lanes, rows multiple of 8 (int32 min tile).
    rows_min = -(-total // _LANES)
    rows8 = max(8, -(-rows_min // 8) * 8)
    if rows8 <= _SPLIT_MIN_ROWS:
        block_rows = rows8                       # single small block
    else:
        # >=2 grid steps so ("parallel",) can shard across both TensorCores
        # on v7x; each block capped at ~1 MiB.
        half = -(-rows8 // 2)
        block_rows = min(_MAX_BLOCK_ROWS, -(-half // 8) * 8)
    rows_pad = -(-rows8 // block_rows) * block_rows
    flat_pad = rows_pad * _LANES

    # Free row-major view; only the tiny tail pad touches extra memory.
    tok2d = jnp.pad(tokens, (0, flat_pad - total)).reshape(rows_pad, _LANES)

    out = pl.pallas_call(
        _tokens_to_snac_kernel,
        out_shape=jax.ShapeDtypeStruct((rows_pad, _LANES), jnp.int32),
        grid=(rows_pad // block_rows,),
        in_specs=[pl.BlockSpec((block_rows, _LANES), lambda i: (i, 0))],
        out_specs=pl.BlockSpec((block_rows, _LANES), lambda i: (i, 0)),
        compiler_params=pltpu.CompilerParams(
            dimension_semantics=("parallel",)),
    )(tok2d)

    # Wrapper-side de-interleave (pure XLA layout plumbing over tiny arrays).
    frames = out.reshape(-1)[:total].reshape(n, 7)
    snac0 = frames[:, 0][None, :]                                   # (1, n)
    snac1 = frames[:, jnp.array([1, 4])].reshape(1, 2 * n)          # (1, 2n)
    snac2 = frames[:, jnp.array([2, 3, 5, 6])].reshape(1, 4 * n)    # (1, 4n)
    codes = [snac0, snac1, snac2]

    if validate:
        # Same upper-bound checks as the original module, fused into ONE
        # device->host sync.  Defaults off on the serving path.
        checks = jnp.stack([jnp.all(c < SNAC_VOCAB_SIZE) for c in codes])
        ok = np.asarray(jax.device_get(checks))
        assert bool(ok[0]), "snac0 must be less than snac_vocab_size"
        assert bool(ok[1]), "snac1 must be less than snac_vocab_size"
        assert bool(ok[2]), "snac2 must be less than snac_vocab_size"
    return codes


def orpheus_forward(output_tokens_full: np.ndarray):
    """Post-generate portion of OrpheusInference.forward.

    `output_tokens_full` stands in for model.generate(...) output (row 0)."""
    # TODO(synk): tokenizer(text) + self.model.generate(...) (autoregressive HF
    # LLM sampling with temperature/top_p/top_k/repetition_penalty) is an
    # external model with no architecture given here; not translatable.
    out = np.asarray(output_tokens_full)
    start_audio_idx = int(np.nonzero(out == START_OF_AUDIO)[0][0])
    output_tokens = out[start_audio_idx + 1:].tolist()
    print("output_tokens length:", len(output_tokens))
    if output_tokens[-1] == END_OF_AUDIO:
        output_tokens = output_tokens[:-1]
    codes = tokens_to_snac(jnp.asarray(output_tokens, dtype=jnp.int32),
                           validate=True)
    # TODO(synk): snac.decode(codes) is an external neural audio codec (not
    # specified in the module source); the SNAC code streams are returned.
    return codes


if __name__ == "__main__":
    key = jax.random.PRNGKey(0)
    n_frames = 250  # typical generation: 250 frames -> 1750 audio tokens

    # Deterministic synthetic "generated" audio tokens: frame i, column j holds
    # audio_token_start + j*snac_vocab_size + code, code in [0, 4096).
    code_vals = jax.random.randint(
        key, (n_frames, 7), 0, SNAC_VOCAB_SIZE, dtype=jnp.int32)
    col_off = jnp.arange(7, dtype=jnp.int32) * SNAC_VOCAB_SIZE
    audio_tokens = (code_vals + col_off[None, :] + AUDIO_TOKEN_START).reshape(-1)

    # Synthetic full generate() output: prompt, start_of_audio, audio, end_of_audio.
    prompt_ids = [START_OF_HUMAN, 1000, 2000, 3000,
                  END_OF_TEXT, END_OF_HUMAN, START_OF_GPT, START_OF_AUDIO]
    output_tokens_full = np.concatenate([
        np.array(prompt_ids, dtype=np.int64),
        np.asarray(audio_tokens, dtype=np.int64),
        np.array([END_OF_AUDIO], dtype=np.int64),
    ])

    codes = orpheus_forward(output_tokens_full)
    codes = [jax.block_until_ready(c) for c in codes]

    # Reference (numpy) implementation of tokens_to_snac for verification.
    toks = np.asarray(audio_tokens).reshape(-1, 7) - AUDIO_TOKEN_START
    ref0 = toks[:, 0][None, :]
    ref1 = np.stack([toks[:, 1] - SNAC_VOCAB_SIZE,
                     toks[:, 4] - 4 * SNAC_VOCAB_SIZE], axis=1).reshape(1, -1)
    ref2 = np.stack([toks[:, 2] - 2 * SNAC_VOCAB_SIZE,
                     toks[:, 3] - 3 * SNAC_VOCAB_SIZE,
                     toks[:, 5] - 5 * SNAC_VOCAB_SIZE,
                     toks[:, 6] - 6 * SNAC_VOCAB_SIZE], axis=1).reshape(1, -1)
    np.testing.assert_array_equal(np.asarray(codes[0]), ref0)
    np.testing.assert_array_equal(np.asarray(codes[1]), ref1)
    np.testing.assert_array_equal(np.asarray(codes[2]), ref2)

    print("KERNEL_OK")
</pallas_src>

<mosaic_0001>
module attributes {stable_mosaic.version = 11 : i64} {
  func.func @_tokens_to_snac_kernel(%arg0: i32, %arg1: memref<16x128xi32, #tpu.memory_space<vmem>>, %arg2: memref<16x128xi32, #tpu.memory_space<vmem>>) attributes {dimension_semantics = [#tpu.dimension_semantics<parallel>], iteration_bounds = array<i64: 1>, scalar_prefetch = 0 : i64, scratch_operands = 0 : i64, tpu.core_type = #tpu.core_type<tc>, window_params = [{transform_indices = @transform_0, window_bounds = array<i64: 16, 128>}, {transform_indices = @transform_1, window_bounds = array<i64: 16, 128>}]} {
    %0 = tpu.iota {dimensions = array<i32: 0>} : vector<16x128xi32>
    %1 = tpu.iota {dimensions = array<i32: 1>} : vector<16x128xi32>
    %c16_i32 = arith.constant 16 : i32
    %2 = arith.muli %arg0, %c16_i32 : i32
    %3 = vector.broadcast %2 : i32 to vector<16x128xi32>
    %4 = arith.addi %3, %0 : vector<16x128xi32>
    %c128_i32 = arith.constant 128 : i32
    %5 = vector.broadcast %c128_i32 : i32 to vector<16x128xi32>
    %6 = arith.muli %4, %5 : vector<16x128xi32>
    %7 = arith.addi %6, %1 : vector<16x128xi32>
    %c7_i32 = arith.constant 7 : i32
    %8 = vector.broadcast %c7_i32 : i32 to vector<16x128xi32>
    %9 = arith.andi %7, %8 : vector<16x128xi32>
    %c3_i32 = arith.constant 3 : i32
    %10 = vector.broadcast %c3_i32 : i32 to vector<16x128xi32>
    %11 = arith.shrsi %7, %10 : vector<16x128xi32>
    %c7_i32_0 = arith.constant 7 : i32
    %12 = vector.broadcast %c7_i32_0 : i32 to vector<16x128xi32>
    %13 = arith.andi %11, %12 : vector<16x128xi32>
    %14 = arith.addi %9, %13 : vector<16x128xi32>
    %c3_i32_1 = arith.constant 3 : i32
    %15 = vector.broadcast %c3_i32_1 : i32 to vector<16x128xi32>
    %16 = arith.shrsi %11, %15 : vector<16x128xi32>
    %c7_i32_2 = arith.constant 7 : i32
    %17 = vector.broadcast %c7_i32_2 : i32 to vector<16x128xi32>
    %18 = arith.andi %16, %17 : vector<16x128xi32>
    %19 = arith.addi %14, %18 : vector<16x128xi32>
    %c3_i32_3 = arith.constant 3 : i32
    %20 = vector.broadcast %c3_i32_3 : i32 to vector<16x128xi32>
    %21 = arith.shrsi %16, %20 : vector<16x128xi32>
    %c7_i32_4 = arith.constant 7 : i32
    %22 = vector.broadcast %c7_i32_4 : i32 to vector<16x128xi32>
    %23 = arith.andi %21, %22 : vector<16x128xi32>
    %24 = arith.addi %19, %23 : vector<16x128xi32>
    %c3_i32_5 = arith.constant 3 : i32
    %25 = vector.broadcast %c3_i32_5 : i32 to vector<16x128xi32>
    %26 = arith.shrsi %21, %25 : vector<16x128xi32>
    %c7_i32_6 = arith.constant 7 : i32
    %27 = vector.broadcast %c7_i32_6 : i32 to vector<16x128xi32>
    %28 = arith.andi %26, %27 : vector<16x128xi32>
    %29 = arith.addi %24, %28 : vector<16x128xi32>
    %c3_i32_7 = arith.constant 3 : i32
    %30 = vector.broadcast %c3_i32_7 : i32 to vector<16x128xi32>
    %31 = arith.shrsi %26, %30 : vector<16x128xi32>
    %c7_i32_8 = arith.constant 7 : i32
    %32 = vector.broadcast %c7_i32_8 : i32 to vector<16x128xi32>
    %33 = arith.andi %31, %32 : vector<16x128xi32>
    %34 = arith.addi %29, %33 : vector<16x128xi32>
    %c3_i32_9 = arith.constant 3 : i32
    %35 = vector.broadcast %c3_i32_9 : i32 to vector<16x128xi32>
    %36 = arith.shrsi %31, %35 : vector<16x128xi32>
    %c7_i32_10 = arith.constant 7 : i32
    %37 = vector.broadcast %c7_i32_10 : i32 to vector<16x128xi32>
    %38 = arith.andi %36, %37 : vector<16x128xi32>
    %39 = arith.addi %34, %38 : vector<16x128xi32>
    %c3_i32_11 = arith.constant 3 : i32
    %40 = vector.broadcast %c3_i32_11 : i32 to vector<16x128xi32>
    %41 = arith.shrsi %36, %40 : vector<16x128xi32>
    %c7_i32_12 = arith.constant 7 : i32
    %42 = vector.broadcast %c7_i32_12 : i32 to vector<16x128xi32>
    %43 = arith.andi %41, %42 : vector<16x128xi32>
    %44 = arith.addi %39, %43 : vector<16x128xi32>
    %c3_i32_13 = arith.constant 3 : i32
    %45 = vector.broadcast %c3_i32_13 : i32 to vector<16x128xi32>
    %46 = arith.shrsi %41, %45 : vector<16x128xi32>
    %c7_i32_14 = arith.constant 7 : i32
    %47 = vector.broadcast %c7_i32_14 : i32 to vector<16x128xi32>
    %48 = arith.andi %46, %47 : vector<16x128xi32>
    %49 = arith.addi %44, %48 : vector<16x128xi32>
    %c3_i32_15 = arith.constant 3 : i32
    %50 = vector.broadcast %c3_i32_15 : i32 to vector<16x128xi32>
    %51 = arith.shrsi %46, %50 : vector<16x128xi32>
    %c7_i32_16 = arith.constant 7 : i32
    %52 = vector.broadcast %c7_i32_16 : i32 to vector<16x128xi32>
    %53 = arith.andi %51, %52 : vector<16x128xi32>
    %54 = arith.addi %49, %53 : vector<16x128xi32>
    %c3_i32_17 = arith.constant 3 : i32
    %55 = vector.broadcast %c3_i32_17 : i32 to vector<16x128xi32>
    %56 = arith.shrsi %51, %55 : vector<16x128xi32>
    %c7_i32_18 = arith.constant 7 : i32
    %57 = vector.broadcast %c7_i32_18 : i32 to vector<16x128xi32>
    %58 = arith.andi %56, %57 : vector<16x128xi32>
    %59 = arith.addi %54, %58 : vector<16x128xi32>
    %c7_i32_19 = arith.constant 7 : i32
    %60 = vector.broadcast %c7_i32_19 : i32 to vector<16x128xi32>
    %61 = arith.andi %59, %60 : vector<16x128xi32>
    %c3_i32_20 = arith.constant 3 : i32
    %62 = vector.broadcast %c3_i32_20 : i32 to vector<16x128xi32>
    %63 = arith.shrsi %59, %62 : vector<16x128xi32>
    %64 = arith.addi %61, %63 : vector<16x128xi32>
    %c7_i32_21 = arith.constant 7 : i32
    %65 = vector.broadcast %c7_i32_21 : i32 to vector<16x128xi32>
    %66 = arith.cmpi sge, %64, %65 : vector<16x128xi32>
    %c7_i32_22 = arith.constant 7 : i32
    %67 = vector.broadcast %c7_i32_22 : i32 to vector<16x128xi32>
    %68 = arith.subi %64, %67 : vector<16x128xi32>
    %69 = arith.select %66, %68, %64 : vector<16x128xi1>, vector<16x128xi32>
    %c7_i32_23 = arith.constant 7 : i32
    %70 = vector.broadcast %c7_i32_23 : i32 to vector<16x128xi32>
    %71 = arith.cmpi sge, %69, %70 : vector<16x128xi32>
    %c7_i32_24 = arith.constant 7 : i32
    %72 = vector.broadcast %c7_i32_24 : i32 to vector<16x128xi32>
    %73 = arith.subi %69, %72 : vector<16x128xi32>
    %74 = arith.select %71, %73, %69 : vector<16x128xi1>, vector<16x128xi32>
    %c0 = arith.constant 0 : index
    %c0_25 = arith.constant 0 : index
    %75 = vector.load %arg1[%c0, %c0_25] : memref<16x128xi32, #tpu.memory_space<vmem>>, vector<16x128xi32>
    %c4096_i32 = arith.constant 4096 : i32
    %76 = vector.broadcast %c4096_i32 : i32 to vector<16x128xi32>
    %77 = arith.muli %74, %76 : vector<16x128xi32>
    %c128266_i32 = arith.constant 128266 : i32
    %78 = vector.broadcast %c128266_i32 : i32 to vector<16x128xi32>
    %79 = arith.addi %77, %78 : vector<16x128xi32>
    %80 = arith.subi %75, %79 : vector<16x128xi32>
    %c0_26 = arith.constant 0 : index
    %c0_27 = arith.constant 0 : index
    %81 = vector.load %arg2[%c0_26, %c0_27] : memref<16x128xi32, #tpu.memory_space<vmem>>, vector<16x128xi32>
    tpu.vector_store %arg2[%c0_26, %c0_27], %80 {strides = array<i32>} : memref<16x128xi32, #tpu.memory_space<vmem>>, vector<16x128xi32>,
    return
  }
  func.func @transform_0(%arg0: i32) -> (i32, i32) {
    %c0_i32 = arith.constant 0 : i32
    %c0_i32_0 = arith.constant 0 : i32
    return %arg0, %c0_i32 : i32, i32
  }
  func.func @transform_1(%arg0: i32) -> (i32, i32) {
    %c0_i32 = arith.constant 0 : i32
    %c0_i32_0 = arith.constant 0 : i32
    return %arg0, %c0_i32 : i32, i32
  }
}

</mosaic_0001>

<bundles_post_ra>
// kernel: tpu_custom_call.1
= control target key start
LH: loop header
LB: loop body
LE: loop exit
PB: predicated region body
PF: predicated region fallthrough
CT: control target
= control target key end

     0   :  { %6 = vsyncpa [#allocation3], 0  ;;  %s233_s0 = inlined_call_operand.hbm [shape: s32[16,128], index: 0, kind: input, shape index: {}]   ;;  %s234_s1 = inlined_call_operand.hbm [shape: s32[16,128], index: 1, kind: output, shape index: {}]  }
   0x1   :  { %7 = vsyncpa [#allocation4], 0  ;;  %s12_s8 = sshll.u32 %s233_s0, 4  ;;  %s207_s9 = smov [#allocation2]   ;;  %s13_s8 = int_to_ptr.hbm [resolvable:$true] %s12_s8 }
   0x2   :  { %s14_s10 = sshll.u32 %s207_s9, 4  ;;  %s208_s11 = smov 128   ;;  %s15_s10 = int_to_ptr.vmem [resolvable:$true] %s14_s10 }
   0x3   :  { %s209_s12 = smov 8  }
   0x4   :  { %20 = dma.hbm_to_vmem [thread:$0]  %s13_s8, 256, %s15_s10, [#allocation3], %s208_s11, %s208_s11, %s209_s12  }
   0x5   :  { %203 = dma.done.wait [#allocation3], 256  }
   0x6   :  { %204 = vsyncadd [#allocation3], 4294967040  ;;  %v25_v0 = vlaneseq  ;;  %s210_s0 = smov [#allocation5]   ;;  %s134_s16 = sshll.u32 %s234_s1, 4  ;;  %s135_s16 = int_to_ptr.hbm [resolvable:$true] %s134_s16 }
   0x7   :  { %s132_s13 = sshll.u32 %s210_s0, 4  ;;  %s133_s13 = int_to_ptr.vmem [resolvable:$true] %s132_s13 }
   0x8   :  { %v26_v1 = vshrl.u32 %v25_v0, 7  ;;  %v29_v2 = vand.u32 127, %v25_v0 }
   0xa   :  { %v34_v3 = vmul.u32 128, %v26_v1  ;;  %v27_v4 = vadd.s32 8, %v26_v1 }
   0xc   :  { %v36_v5 = vadd.s32 %v34_v3, %v29_v2  ;;  %v35_v6 = vmul.u32 128, %v27_v4 }
   0xe   :  { %v38_v7 = vand.u32 7, %v36_v5  ;;  %v40_v8 = vshra.s32 %v36_v5, 3  ;;  %v37_v9 = vadd.s32 %v35_v6, %v29_v2 }
  0x10   :  { %v42_v10 = vand.u32 7, %v40_v8  ;;  %v46_v11 = vshra.s32 %v40_v8, 3  ;;  %v39_v12 = vand.u32 7, %v37_v9  ;;  %v41_v13 = vshra.s32 %v37_v9, 3 }
  0x12   :  { %v44_v14 = vadd.s32 %v42_v10, %v38_v7  ;;  %v48_v15 = vand.u32 7, %v46_v11  ;;  %v52_v16 = vshra.s32 %v46_v11, 3  ;;  %v43_v17 = vand.u32 7, %v41_v13 }
  0x13   :  { %v47_v18 = vshra.s32 %v41_v13, 3 }
  0x14   :  { %v50_v19 = vadd.s32 %v48_v15, %v44_v14  ;;  %v54_v20 = vand.u32 7, %v52_v16  ;;  %v58_v21 = vshra.s32 %v52_v16, 3  ;;  %v45_v22 = vadd.s32 %v43_v17, %v39_v12 }
  0x15   :  { %v49_v23 = vand.u32 7, %v47_v18  ;;  %v53_v24 = vshra.s32 %v47_v18, 3 }
  0x16   :  { %v56_v25 = vadd.s32 %v54_v20, %v50_v19  ;;  %v60_v26 = vand.u32 7, %v58_v21  ;;  %v64_v27 = vshra.s32 %v58_v21, 3  ;;  %v118_v20 = vld [vmem:[#allocation2] sm:$0xff] }
  0x17   :  { %v51_v28 = vadd.s32 %v49_v23, %v45_v22  ;;  %v55_v29 = vand.u32 7, %v53_v24  ;;  %v59_v30 = vshra.s32 %v53_v24, 3 }
  0x18   :  { %v62_v31 = vadd.s32 %v60_v26, %v56_v25  ;;  %v66_v32 = vand.u32 7, %v64_v27  ;;  %v70_v33 = vshra.s32 %v64_v27, 3  ;;  %v119_v25 = vld [vmem:[#allocation2 + $0x8] sm:$0xff] }
  0x19   :  { %v57_v34 = vadd.s32 %v55_v29, %v51_v28  ;;  %v61_v35 = vand.u32 7, %v59_v30  ;;  %v65_v36 = vshra.s32 %v59_v30, 3 }
  0x1a   :  { %v68_v37 = vadd.s32 %v66_v32, %v62_v31  ;;  %v72_v38 = vand.u32 7, %v70_v33  ;;  %v76_v39 = vshra.s32 %v70_v33, 3 }
  0x1b   :  { %v63_v40 = vadd.s32 %v61_v35, %v57_v34  ;;  %v67_v41 = vand.u32 7, %v65_v36  ;;  %v71_v42 = vshra.s32 %v65_v36, 3 }
  0x1c   :  { %v74_v43 = vadd.s32 %v72_v38, %v68_v37  ;;  %v78_v44 = vand.u32 7, %v76_v39  ;;  %v82_v45 = vshra.s32 %v76_v39, 3 }
  0x1d   :  { %v69_v46 = vadd.s32 %v67_v41, %v63_v40  ;;  %v73_v47 = vand.u32 7, %v71_v42  ;;  %v77_v48 = vshra.s32 %v71_v42, 3 }
  0x1e   :  { %v80_v49 = vadd.s32 %v78_v44, %v74_v43  ;;  %v84_v50 = vand.u32 7, %v82_v45  ;;  %v88_v51 = vshra.s32 %v82_v45, 3 }
  0x1f   :  { %v75_v52 = vadd.s32 %v73_v47, %v69_v46  ;;  %v79_v53 = vand.u32 7, %v77_v48  ;;  %v83_v54 = vshra.s32 %v77_v48, 3 }
  0x20   :  { %v86_v55 = vadd.s32 %v84_v50, %v80_v49  ;;  %v90_v56 = vand.u32 7, %v88_v51  ;;  %v94_v57 = vshra.s32 %v88_v51, 3 }
  0x21   :  { %v81_v58 = vadd.s32 %v79_v53, %v75_v52  ;;  %v85_v59 = vand.u32 7, %v83_v54  ;;  %v89_v60 = vshra.s32 %v83_v54, 3 }
  0x22   :  { %v92_v61 = vadd.s32 %v90_v56, %v86_v55  ;;  %v96_v62 = vand.u32 7, %v94_v57 }
  0x23   :  { %v87_v63 = vadd.s32 %v85_v59, %v81_v58  ;;  %v91_v0 = vand.u32 7, %v89_v60  ;;  %v95_v1 = vshra.s32 %v89_v60, 3 }
  0x24   :  { %v98_v2 = vadd.s32 %v96_v62, %v92_v61 }
  0x25   :  { %v93_v3 = vadd.s32 %v91_v0, %v87_v63  ;;  %v97_v4 = vand.u32 7, %v95_v1 }
  0x26   :  { %v100_v5 = vand.u32 7, %v98_v2  ;;  %v102_v6 = vshra.s32 %v98_v2, 3 }
  0x27   :  { %v99_v7 = vadd.s32 %v97_v4, %v93_v3 }
  0x28   :  { %v104_v8 = vadd.s32 %v102_v6, %v100_v5 }
  0x29   :  { %v101_v9 = vand.u32 7, %v99_v7  ;;  %v103_v10 = vshra.s32 %v99_v7, 3 }
  0x2a   :  { %vm106_vm0 = vcmp.ge.s32.totalorder %v104_v8, 7  ;;  %v147_v11 = vadd.s32 4294967289, %v104_v8 }
  0x2b   :  { %v105_v12 = vadd.s32 %v103_v10, %v101_v9 }
  0x2c   :  { %v110_v13 = vsel %vm106_vm0, %v147_v11, %v104_v8 }
  0x2d   :  { %vm112_vm1 = vcmp.ge.s32.totalorder %v110_v13, 7  ;;  %v149_v14 = vadd.s32 4294967289, %v110_v13  ;;  %vm107_vm2 = vcmp.ge.s32.totalorder %v105_v12, 7  ;;  %v148_v15 = vadd.s32 4294967289, %v105_v12 }
  0x2f   :  { %v116_v16 = vsel %vm112_vm1, %v149_v14, %v110_v13  ;;  %v111_v17 = vsel %vm107_vm2, %v148_v15, %v105_v12 }
  0x30   :  { %v120_v18 = vmul.u32 4096, %v116_v16  ;;  %vm113_vm3 = vcmp.ge.s32.totalorder %v111_v17, 7  ;;  %v150_v19 = vadd.s32 4294967289, %v111_v17 }
  0x32   :  { %v122_v21 = vadd.s32 128266, %v120_v18  ;;  %v117_v22 = vsel %vm113_vm3, %v150_v19, %v111_v17 }
  0x33   :  { %v121_v23 = vmul.u32 4096, %v117_v22 }
  0x34   :  { %v124_v24 = vsub.s32 %v118_v20, %v122_v21 }
  0x35   :  { %v123_v26 = vadd.s32 128266, %v121_v23 }
  0x36   :  { %126 = vst [vmem:[#allocation5] sm:$0xff] %v124_v24 }
  0x37   :  { %v125_v27 = vsub.s32 %v119_v25, %v123_v26 }
  0x39   :  { %127 = vst [vmem:[#allocation5 + $0x8] sm:$0xff] %v125_v27 }
  0x3a   :  { %140 = dma.vmem_to_hbm [thread:$0]  %s133_s13, 256, %s135_s16, [#allocation4], %s208_s11, %s208_s11, %s209_s12  }
  0x3b   :  { %205 = dma.done.wait [#allocation4], 256  }
  0x3c   :  { %206 = vsyncadd [#allocation4], 4294967040 }
  0x3d   :  { %145 = vsyncpa [#allocation3], 1 }
  0x3e   :  { %146 = vsyncpa [#allocation4], 1 }

</bundles_post_ra>
